<compile_context>
chip_gen: v7x
topology: tpu7x:2x2x1
jax: 0.10.0
libtpu: 0.0.40
codegen_flags: <defaults>
</compile_context>

<pallas_src>
import functools

import jax
import jax.numpy as jnp
from jax.experimental import pallas as pl
from jax.experimental.pallas import tpu as pltpu


def _round_up(x, m):
    return ((x + m - 1) // m) * m


def _nonlocal_flash_kernel(x_q_ref,    # (1, C, tq)  query-side spatial tile of x
                           x_k_ref,    # (1, C, tk)  key/value-side spatial tile of x
                           w_ref,      # (2*Cip + C, C)  packed Wq | Wk | gamma*Wv
                           b_ref,      # (2*Cip + C, 1)  packed bq | bk | gamma*bv
                           o_ref,      # (1, C, tq)
                           q_sc,       # VMEM (Cip, tq)  query-projection cache
                           m_sc,       # VMEM (1, tq)    running max
                           l_sc,       # VMEM (1, tq)    running denominator
                           acc_sc,     # VMEM (C, tq)    running un-normalized output
                           *, mxu_dtype):
    kj = pl.program_id(2)
    n_k = pl.num_programs(2)

    n_out, c_in = w_ref.shape
    cip = (n_out - c_in) // 2            # padded reduced-channel count (multiple of 8)

    w = w_ref[...]
    bias = b_ref[...]

    # ---- init + query projection: once per (batch, query-tile) --------------
    @pl.when(kj == 0)
    def _():
        m_sc[...] = jnp.full_like(m_sc, -jnp.inf)
        l_sc[...] = jnp.zeros_like(l_sc)
        acc_sc[...] = jnp.zeros_like(acc_sc)
        xq = x_q_ref[0]                                            # (C, tq)
        q_sc[...] = (jnp.dot(w[:cip].astype(mxu_dtype), xq.astype(mxu_dtype),
                             preferred_element_type=jnp.float32)
                     + bias[:cip])                                 # (Cip, tq)

    # ---- fused key/value projection for this key tile ------------------------
    xk = x_k_ref[0]                                                # (C, tk)
    kv = (jnp.dot(w[cip:].astype(mxu_dtype), xk.astype(mxu_dtype),
                  preferred_element_type=jnp.float32)
          + bias[cip:])                                            # (Cip + C, tk)
    k = kv[:cip]                                                   # (Cip, tk)  (pad rows == 0)
    v = kv[cip:]                                                   # (C,   tk)  (gamma already folded)

    # energy^T[j, i] = sum_c k[c, j] * q[c, i]  -> (tk, tq), queries on lanes.
    q = q_sc[...]
    e = jax.lax.dot_general(
        k.astype(mxu_dtype), q.astype(mxu_dtype),
        dimension_numbers=(((0,), (0,)), ((), ())),
        preferred_element_type=jnp.float32)                        # (tk, tq)

    # ---- online softmax over the key axis (axis 0), normalization deferred --
    m_cur = jnp.max(e, axis=0, keepdims=True)                      # (1, tq)
    m_new = jnp.maximum(m_sc[...], m_cur)
    alpha = jnp.exp(m_sc[...] - m_new)                             # (1, tq)
    p = jnp.exp(e - m_new)                                         # (tk, tq)
    l_sc[...] = alpha * l_sc[...] + jnp.sum(p, axis=0, keepdims=True)
    acc_sc[...] = alpha * acc_sc[...] + jnp.dot(
        v.astype(mxu_dtype), p.astype(mxu_dtype),
        preferred_element_type=jnp.float32)                        # (C, tq)
    m_sc[...] = m_new

    # ---- finalize: exact normalization of only C*tq values -------------------
    @pl.when(kj == n_k - 1)
    def _():
        out = acc_sc[...] * pl.reciprocal(l_sc[...], approx=False)
        o_ref[0] = out.astype(o_ref.dtype)


def _pack_qkv_weights(wq, bq, wk, bk, wv, bv, gamma):
    """Pack PyTorch-layout 1x1-conv weights into one fused (2*Cip+C, C) matrix.

    wq, wk: (Ci, C); wv: (C, C); biases: (Ci,), (Ci,), (C,).  The reduced
    channel dim Ci is zero-padded to a multiple of 8 so in-kernel slices land
    on sublane boundaries (pad rows contribute exactly 0 to the energy).
    gamma is folded into Wv/bv so the kernel never multiplies by it.
    """
    ci, c = wq.shape
    cip = _round_up(ci, 8)
    g = jnp.asarray(gamma, jnp.float32).reshape(())

    def pad_w(w):
        return jnp.pad(w, ((0, cip - w.shape[0]), (0, 0)))

    def pad_b(b):
        return jnp.pad(b, ((0, cip - b.shape[0]),))

    w_qkv = jnp.concatenate([pad_w(wq), pad_w(wk), g * wv], axis=0)           # (2*Cip+C, C)
    b_qkv = jnp.concatenate([pad_b(bq), pad_b(bk), g * bv], axis=0)[:, None]  # (2*Cip+C, 1)
    return w_qkv, b_qkv


def _pick_tile(hw):
    """Flash tile size over the spatial axis: 256 (v6e/v7x MXU native) when it
    factors, 128 (v5e native / lane width) otherwise, full extent for small or
    awkward HW."""
    for t in (256, 128):
        if hw > t and hw % t == 0:
            return t
    return hw


def nonlocal_block(x_nchw, wq, bq, wk, bk, wv, bv, gamma, *, mxu_dtype=jnp.float32):
    """x_nchw: (B, C, H, W).  wq/wk: (Ci, C), wv: (C, C), 1-D biases (PyTorch layout)."""
    B, C, H, W = x_nchw.shape
    HW = H * W

    # NCHW -> (B, C, HW): the natural contiguous view, zero cost.
    x_flat = x_nchw.reshape(B, C, HW)

    w_qkv, b_qkv = _pack_qkv_weights(wq, bq, wk, bk, wv, bv, gamma)
    n_out = w_qkv.shape[0]
    cip = (n_out - C) // 2

    tq = _pick_tile(HW)
    tk = _pick_tile(HW)
    n_q = HW // tq
    n_k = HW // tk

    # Per-step VMEM footprint (double-buffered blocks + scratch + softmax
    # intermediates), with 2x headroom, capped at 48 MiB so the same value is
    # safe on v7x (64 MiB physical) as well as v5e/v6e (128 MiB).
    f32b = 4
    est = 2 * (C * tq + C * tk + C * tq) * f32b      # x_q / x_k / out blocks, double buffered
    est += 2 * (n_out * C + n_out) * f32b            # packed weights + bias
    est += (cip * tq + 2 * tq + C * tq) * f32b       # q / m / l / acc scratch
    est += 3 * tk * tq * f32b                        # energy / p intermediates
    vmem_limit = int(min(max(2 * est, 32 * 1024 * 1024), 48 * 1024 * 1024))

    kernel = functools.partial(_nonlocal_flash_kernel, mxu_dtype=mxu_dtype)

    out_flat = pl.pallas_call(
        kernel,
        out_shape=jax.ShapeDtypeStruct((B, C, HW), x_nchw.dtype),
        grid_spec=pltpu.PrefetchScalarGridSpec(
            num_scalar_prefetch=0,
            grid=(B, n_q, n_k),
            in_specs=[
                pl.BlockSpec((1, C, tq), lambda b, qi, kj: (b, 0, qi)),   # x, query tile
                pl.BlockSpec((1, C, tk), lambda b, qi, kj: (b, 0, kj)),   # x, key tile
                pl.BlockSpec((n_out, C), lambda b, qi, kj: (0, 0)),       # packed W_qkv
                pl.BlockSpec((n_out, 1), lambda b, qi, kj: (0, 0)),       # packed b_qkv
            ],
            out_specs=pl.BlockSpec((1, C, tq), lambda b, qi, kj: (b, 0, qi)),
            scratch_shapes=[
                pltpu.VMEM((cip, tq), jnp.float32),   # cached query projection
                pltpu.VMEM((1, tq), jnp.float32),     # running max
                pltpu.VMEM((1, tq), jnp.float32),     # running denominator
                pltpu.VMEM((C, tq), jnp.float32),     # running output accumulator
            ],
        ),
        compiler_params=pltpu.CompilerParams(
            dimension_semantics=("parallel", "parallel", "arbitrary"),
            vmem_limit_bytes=vmem_limit,
        ),
    )(x_flat, x_flat, w_qkv, b_qkv)

    # (B, C, HW) -> NCHW: zero-cost reshape (matches torch .view(B, C, H, W)).
    return out_flat.reshape(B, C, H, W)


def _reference(x_nchw, wq, bq, wk, bk, wv, bv, gamma):
    """Plain-JAX reference mirroring the PyTorch NonLocalBlock forward."""
    B, C, H, W = x_nchw.shape
    HW = H * W
    xf = x_nchw.reshape(B, C, HW)
    q = jnp.einsum("oc,bch->boh", wq, xf) + bq[None, :, None]    # (B, Ci, HW)
    k = jnp.einsum("oc,bch->boh", wk, xf) + bk[None, :, None]
    v = jnp.einsum("oc,bch->boh", wv, xf) + bv[None, :, None]    # (B, C, HW)
    energy = jnp.einsum("bci,bcj->bij", q, k)                    # (B, HW, HW)
    attn = jax.nn.softmax(energy, axis=-1)
    out = jnp.einsum("bcj,bij->bci", v, attn)                    # (B, C, HW)
    out = gamma.reshape(()) * out
    return out.reshape(B, C, H, W)


if __name__ == "__main__":
    # Shapes consistent with NonLocalBlock(planes=32, reduce_ratio=8).
    # HW = 256 -> two 128-wide query tiles x two 128-wide key tiles, so the
    # flash accumulation path and the pipelined grid (2*2*2 = 8 steps) are
    # both exercised.
    B, C, H, W = 2, 32, 16, 16
    reduce_ratio = 8
    Ci = C // reduce_ratio

    key = jax.random.PRNGKey(0)
    kx, kq, kbq, kk, kbk, kv, kbv = jax.random.split(key, 7)

    x = jax.random.normal(kx, (B, C, H, W), dtype=jnp.float32)

    # Conv2d(kernel_size=1) weights in PyTorch (out_ch, in_ch) layout.
    scale = 1.0 / (C ** 0.5)
    wq = jax.random.normal(kq, (Ci, C), dtype=jnp.float32) * scale
    bq = jax.random.normal(kbq, (Ci,), dtype=jnp.float32) * 0.1
    wk = jax.random.normal(kk, (Ci, C), dtype=jnp.float32) * scale
    bk = jax.random.normal(kbk, (Ci,), dtype=jnp.float32) * 0.1
    wv = jax.random.normal(kv, (C, C), dtype=jnp.float32) * scale
    bv = jax.random.normal(kbv, (C,), dtype=jnp.float32) * 0.1
    # PyTorch inits gamma to 0; non-zero here so the output is non-trivial.
    gamma = jnp.array([0.5], dtype=jnp.float32)

    out = jax.block_until_ready(nonlocal_block(x, wq, bq, wk, bk, wv, bv, gamma))
    ref = _reference(x, wq, bq, wk, bk, wv, bv, gamma)

    assert out.shape == (B, C, H, W)
    err = jnp.max(jnp.abs(out - ref))
    assert jnp.allclose(out, ref, atol=5e-4, rtol=5e-4), f"max abs err = {err}"

    print("KERNEL_OK")
</pallas_src>

<mosaic_0001>
module attributes {stable_mosaic.version = 11 : i64} {
  func.func @_nonlocal_flash_kernel(%arg0: i32, %arg1: i32, %arg2: i32, %arg3: memref<1x32x128xf32, #tpu.memory_space<vmem>>, %arg4: memref<1x32x128xf32, #tpu.memory_space<vmem>>, %arg5: memref<48x32xf32, #tpu.memory_space<vmem>>, %arg6: memref<48x1xf32, #tpu.memory_space<vmem>>, %arg7: memref<1x32x128xf32, #tpu.memory_space<vmem>>, %arg8: memref<8x128xf32, #tpu.memory_space<vmem>>, %arg9: memref<1x128xf32, #tpu.memory_space<vmem>>, %arg10: memref<1x128xf32, #tpu.memory_space<vmem>>, %arg11: memref<32x128xf32, #tpu.memory_space<vmem>>) attributes {dimension_semantics = [#tpu.dimension_semantics<parallel>, #tpu.dimension_semantics<parallel>, #tpu.dimension_semantics<arbitrary>], iteration_bounds = array<i64: 2, 2, 2>, scalar_prefetch = 0 : i64, scratch_operands = 4 : i64, tpu.core_type = #tpu.core_type<tc>, window_params = [{transform_indices = @transform_0, window_bounds = array<i64: 1, 32, 128>}, {transform_indices = @transform_1, window_bounds = array<i64: 1, 32, 128>}, {pipeline_mode = #tpu.pipeline_mode<synchronous>, transform_indices = @transform_2, window_bounds = array<i64: 48, 32>}, {pipeline_mode = #tpu.pipeline_mode<synchronous>, transform_indices = @transform_3, window_bounds = array<i64: 48, 1>}, {transform_indices = @transform_4, window_bounds = array<i64: 1, 32, 128>}]} {
    %c0 = arith.constant 0 : index
    %c0_0 = arith.constant 0 : index
    %0 = vector.load %arg5[%c0, %c0_0] : memref<48x32xf32, #tpu.memory_space<vmem>>, vector<48x32xf32>
    %c0_1 = arith.constant 0 : index
    %c0_2 = arith.constant 0 : index
    %1 = vector.load %arg6[%c0_1, %c0_2] : memref<48x1xf32, #tpu.memory_space<vmem>>, vector<48x1xf32>
    %c0_i32 = arith.constant 0 : i32
    %2 = arith.cmpi eq, %arg2, %c0_i32 : i32
    %3 = arith.extui %2 : i1 to i32
    %c0_i32_3 = arith.constant 0 : i32
    %4 = arith.cmpi ne, %3, %c0_i32_3 : i32
    scf.if %4 {
      %cst_28 = arith.constant 0xFF800000 : f32
      %42 = vector.broadcast %cst_28 : f32 to vector<1x128xf32>
      %c0_29 = arith.constant 0 : index
      %c0_30 = arith.constant 0 : index
      %43 = vector.load %arg9[%c0_29, %c0_30] : memref<1x128xf32, #tpu.memory_space<vmem>>, vector<1x128xf32>
      tpu.vector_store %arg9[%c0_29, %c0_30], %42 {strides = array<i32>} : memref<1x128xf32, #tpu.memory_space<vmem>>, vector<1x128xf32>,
      %cst_31 = arith.constant 0.000000e+00 : f32
      %44 = vector.broadcast %cst_31 : f32 to vector<1x128xf32>
      %c0_32 = arith.constant 0 : index
      %c0_33 = arith.constant 0 : index
      %45 = vector.load %arg10[%c0_32, %c0_33] : memref<1x128xf32, #tpu.memory_space<vmem>>, vector<1x128xf32>
      tpu.vector_store %arg10[%c0_32, %c0_33], %44 {strides = array<i32>} : memref<1x128xf32, #tpu.memory_space<vmem>>, vector<1x128xf32>,
      %cst_34 = arith.constant 0.000000e+00 : f32
      %46 = vector.broadcast %cst_34 : f32 to vector<32x128xf32>
      %c0_35 = arith.constant 0 : index
      %c0_36 = arith.constant 0 : index
      %47 = vector.load %arg11[%c0_35, %c0_36] : memref<32x128xf32, #tpu.memory_space<vmem>>, vector<32x128xf32>
      tpu.vector_store %arg11[%c0_35, %c0_36], %46 {strides = array<i32>} : memref<32x128xf32, #tpu.memory_space<vmem>>, vector<32x128xf32>,
      %c0_37 = arith.constant 0 : index
      %c0_38 = arith.constant 0 : index
      %c0_39 = arith.constant 0 : index
      %48 = vector.load %arg3[%c0_37, %c0_38, %c0_39] : memref<1x32x128xf32, #tpu.memory_space<vmem>>, vector<1x32x128xf32>
      %49 = vector.shape_cast %48 : vector<1x32x128xf32> to vector<32x128xf32>
      %50 = vector.extract_strided_slice %0 {offsets = [0, 0], sizes = [8, 32], strides = [1, 1]} : vector<48x32xf32> to vector<8x32xf32>
      %cst_40 = arith.constant dense<0.000000e+00> : vector<8x128xf32>
      %51 = tpu.matmul %50, %49, %cst_40 {dimension_numbers = #tpu.dot_dimension_numbers<[1], [0], [0], [1], [0, 0, 1, 1], [], []>} : vector<8x32xf32>, vector<32x128xf32>, vector<8x128xf32> -> vector<8x128xf32>
      %52 = vector.extract_strided_slice %1 {offsets = [0, 0], sizes = [8, 1], strides = [1, 1]} : vector<48x1xf32> to vector<8x1xf32>
      %53 = vector.broadcast %52 : vector<8x1xf32> to vector<8x128xf32>
      %54 = arith.addf %51, %53 : vector<8x128xf32>
      %c0_41 = arith.constant 0 : index
      %c0_42 = arith.constant 0 : index
      %55 = vector.load %arg8[%c0_41, %c0_42] : memref<8x128xf32, #tpu.memory_space<vmem>>, vector<8x128xf32>
      tpu.vector_store %arg8[%c0_41, %c0_42], %54 {strides = array<i32>} : memref<8x128xf32, #tpu.memory_space<vmem>>, vector<8x128xf32>,
    } else {
    }
    %c0_4 = arith.constant 0 : index
    %c0_5 = arith.constant 0 : index
    %c0_6 = arith.constant 0 : index
    %5 = vector.load %arg4[%c0_4, %c0_5, %c0_6] : memref<1x32x128xf32, #tpu.memory_space<vmem>>, vector<1x32x128xf32>
    %6 = vector.shape_cast %5 : vector<1x32x128xf32> to vector<32x128xf32>
    %7 = vector.extract_strided_slice %0 {offsets = [8, 0], sizes = [40, 32], strides = [1, 1]} : vector<48x32xf32> to vector<40x32xf32>
    %cst = arith.constant dense<0.000000e+00> : vector<40x128xf32>
    %8 = tpu.matmul %7, %6, %cst {dimension_numbers = #tpu.dot_dimension_numbers<[1], [0], [0], [1], [0, 0, 1, 1], [], []>} : vector<40x32xf32>, vector<32x128xf32>, vector<40x128xf32> -> vector<40x128xf32>
    %9 = vector.extract_strided_slice %1 {offsets = [8, 0], sizes = [40, 1], strides = [1, 1]} : vector<48x1xf32> to vector<40x1xf32>
    %10 = vector.broadcast %9 : vector<40x1xf32> to vector<40x128xf32>
    %11 = arith.addf %8, %10 : vector<40x128xf32>
    %12 = vector.extract_strided_slice %11 {offsets = [0, 0], sizes = [8, 128], strides = [1, 1]} : vector<40x128xf32> to vector<8x128xf32>
    %13 = vector.extract_strided_slice %11 {offsets = [8, 0], sizes = [32, 128], strides = [1, 1]} : vector<40x128xf32> to vector<32x128xf32>
    %c0_7 = arith.constant 0 : index
    %c0_8 = arith.constant 0 : index
    %14 = vector.load %arg8[%c0_7, %c0_8] : memref<8x128xf32, #tpu.memory_space<vmem>>, vector<8x128xf32>
    %cst_9 = arith.constant dense<0.000000e+00> : vector<128x128xf32>
    %15 = tpu.matmul %12, %14, %cst_9 {dimension_numbers = #tpu.dot_dimension_numbers<[0], [0], [1], [1], [0, 1, 1, 1], [], []>} : vector<8x128xf32>, vector<8x128xf32>, vector<128x128xf32> -> vector<128x128xf32>
    %cst_10 = arith.constant dense<0xFF800000> : vector<128xf32>
    %16 = vector.multi_reduction <maximumf>, %15, %cst_10 [0] : vector<128x128xf32> to vector<128xf32>
    %17 = vector.shape_cast %16 : vector<128xf32> to vector<1x128xf32>
    %c0_11 = arith.constant 0 : index
    %c0_12 = arith.constant 0 : index
    %18 = vector.load %arg9[%c0_11, %c0_12] : memref<1x128xf32, #tpu.memory_space<vmem>>, vector<1x128xf32>
    %19 = arith.maximumf %18, %17 : vector<1x128xf32>
    %c0_13 = arith.constant 0 : index
    %c0_14 = arith.constant 0 : index
    %20 = vector.load %arg9[%c0_13, %c0_14] : memref<1x128xf32, #tpu.memory_space<vmem>>, vector<1x128xf32>
    %21 = arith.subf %20, %19 : vector<1x128xf32>
    %22 = math.exp %21 : vector<1x128xf32>
    %23 = vector.broadcast %19 : vector<1x128xf32> to vector<128x128xf32>
    %24 = arith.subf %15, %23 : vector<128x128xf32>
    %25 = math.exp %24 : vector<128x128xf32>
    %c0_15 = arith.constant 0 : index
    %c0_16 = arith.constant 0 : index
    %26 = vector.load %arg10[%c0_15, %c0_16] : memref<1x128xf32, #tpu.memory_space<vmem>>, vector<1x128xf32>
    %27 = arith.mulf %22, %26 : vector<1x128xf32>
    %cst_17 = arith.constant dense<0.000000e+00> : vector<128xf32>
    %28 = vector.multi_reduction <add>, %25, %cst_17 [0] : vector<128x128xf32> to vector<128xf32>
    %29 = vector.shape_cast %28 : vector<128xf32> to vector<1x128xf32>
    %30 = arith.addf %27, %29 : vector<1x128xf32>
    %c0_18 = arith.constant 0 : index
    %c0_19 = arith.constant 0 : index
    %31 = vector.load %arg10[%c0_18, %c0_19] : memref<1x128xf32, #tpu.memory_space<vmem>>, vector<1x128xf32>
    tpu.vector_store %arg10[%c0_18, %c0_19], %30 {strides = array<i32>} : memref<1x128xf32, #tpu.memory_space<vmem>>, vector<1x128xf32>,
    %c0_20 = arith.constant 0 : index
    %c0_21 = arith.constant 0 : index
    %32 = vector.load %arg11[%c0_20, %c0_21] : memref<32x128xf32, #tpu.memory_space<vmem>>, vector<32x128xf32>
    %33 = vector.broadcast %22 : vector<1x128xf32> to vector<32x128xf32>
    %34 = arith.mulf %33, %32 : vector<32x128xf32>
    %cst_22 = arith.constant dense<0.000000e+00> : vector<32x128xf32>
    %35 = tpu.matmul %13, %25, %cst_22 {dimension_numbers = #tpu.dot_dimension_numbers<[1], [0], [0], [1], [0, 0, 1, 1], [], []>} : vector<32x128xf32>, vector<128x128xf32>, vector<32x128xf32> -> vector<32x128xf32>
    %36 = arith.addf %34, %35 : vector<32x128xf32>
    %c0_23 = arith.constant 0 : index
    %c0_24 = arith.constant 0 : index
    %37 = vector.load %arg11[%c0_23, %c0_24] : memref<32x128xf32, #tpu.memory_space<vmem>>, vector<32x128xf32>
    tpu.vector_store %arg11[%c0_23, %c0_24], %36 {strides = array<i32>} : memref<32x128xf32, #tpu.memory_space<vmem>>, vector<32x128xf32>,
    %c0_25 = arith.constant 0 : index
    %c0_26 = arith.constant 0 : index
    %38 = vector.load %arg9[%c0_25, %c0_26] : memref<1x128xf32, #tpu.memory_space<vmem>>, vector<1x128xf32>
    tpu.vector_store %arg9[%c0_25, %c0_26], %19 {strides = array<i32>} : memref<1x128xf32, #tpu.memory_space<vmem>>, vector<1x128xf32>,
    %c1_i32 = arith.constant 1 : i32
    %39 = arith.cmpi eq, %arg2, %c1_i32 : i32
    %40 = arith.extui %39 : i1 to i32
    %c0_i32_27 = arith.constant 0 : i32
    %41 = arith.cmpi ne, %40, %c0_i32_27 : i32
    scf.if %41 {
      %c0_28 = arith.constant 0 : index
      %c0_29 = arith.constant 0 : index
      %42 = vector.load %arg11[%c0_28, %c0_29] : memref<32x128xf32, #tpu.memory_space<vmem>>, vector<32x128xf32>
      %c0_30 = arith.constant 0 : index
      %c0_31 = arith.constant 0 : index
      %43 = vector.load %arg10[%c0_30, %c0_31] : memref<1x128xf32, #tpu.memory_space<vmem>>, vector<1x128xf32>
      %44 = tpu.reciprocal %43 : vector<1x128xf32> -> vector<1x128xf32>
      %45 = vector.broadcast %44 : vector<1x128xf32> to vector<32x128xf32>
      %46 = arith.mulf %42, %45 : vector<32x128xf32>
      %c0_32 = arith.constant 0 : index
      %c0_33 = arith.constant 0 : index
      %c0_34 = arith.constant 0 : index
      %47 = vector.load %arg7[%c0_32, %c0_33, %c0_34] : memref<1x32x128xf32, #tpu.memory_space<vmem>>, vector<1x32x128xf32>
      %48 = vector.shape_cast %47 : vector<1x32x128xf32> to vector<32x128xf32>
      %49 = vector.shape_cast %46 : vector<32x128xf32> to vector<1x32x128xf32>
      tpu.vector_store %arg7[%c0_32, %c0_33, %c0_34], %49 {strides = array<i32>} : memref<1x32x128xf32, #tpu.memory_space<vmem>>, vector<1x32x128xf32>,
    } else {
    }
    return
  }
  func.func @transform_0(%arg0: i32, %arg1: i32, %arg2: i32) -> (i32, i32, i32) {
    %c0_i32 = arith.constant 0 : i32
    %c0_i32_0 = arith.constant 0 : i32
    return %arg0, %c0_i32, %arg1 : i32, i32, i32
  }
  func.func @transform_1(%arg0: i32, %arg1: i32, %arg2: i32) -> (i32, i32, i32) {
    %c0_i32 = arith.constant 0 : i32
    %c0_i32_0 = arith.constant 0 : i32
    return %arg0, %c0_i32, %arg2 : i32, i32, i32
  }
  func.func @transform_2(%arg0: i32, %arg1: i32, %arg2: i32) -> (i32, i32) {
    %c0_i32 = arith.constant 0 : i32
    %c0_i32_0 = arith.constant 0 : i32
    %c0_i32_1 = arith.constant 0 : i32
    return %c0_i32, %c0_i32_0 : i32, i32
  }
  func.func @transform_3(%arg0: i32, %arg1: i32, %arg2: i32) -> (i32, i32) {
    %c0_i32 = arith.constant 0 : i32
    %c0_i32_0 = arith.constant 0 : i32
    %c0_i32_1 = arith.constant 0 : i32
    return %c0_i32, %c0_i32_0 : i32, i32
  }
  func.func @transform_4(%arg0: i32, %arg1: i32, %arg2: i32) -> (i32, i32, i32) {
    %c0_i32 = arith.constant 0 : i32
    %c0_i32_0 = arith.constant 0 : i32
    return %arg0, %c0_i32, %arg1 : i32, i32, i32
  }
}

</mosaic_0001>

<bundles_post_ra>
// kernel: tpu_custom_call.1
= control target key start
LH: loop header
LB: loop body
LE: loop exit
PB: predicated region body
PF: predicated region fallthrough
CT: control target
= control target key end

     0   :  { %s2182_s0 = inlined_call_operand.vmem [shape: f32[2,32,256], index: 0, kind: input, shape index: {}]   ;;  %s2183_s1 = inlined_call_operand.hbm [shape: f32[2,32,256], index: 1, kind: input, shape index: {}]   ;;  %s2184_s2 = inlined_call_operand.vmem [shape: f32[48,32], index: 2, kind: input, shape index: {}]   ;;  %s2185_s3 = inlined_call_operand.vmem [shape: f32[48,1], index: 3, kind: input, shape index: {}]   ;;  %s2186_s4 = inlined_call_operand.hbm [shape: f32[2,32,256], index: 4, kind: output, shape index: {}]  }
   0x1   :  { %2194 = sst [smem:[#allocation18_spill]] %s2182_s0 }
   0x2   :  { %2195 = sst [smem:[#allocation19_spill]] %s2183_s1 }
   0x3   :  { %2196 = sst [smem:[#allocation20_spill]] %s2186_s4 }
   0x4   :  { %9 = vsyncpa [#allocation8], 0 }
   0x5   :  { %11 = vsyncpa [#allocation8 + $0x1], 0 }
   0x6   :  { %12 = vsyncpa [#allocation9], 0 }
   0x7   :  { %14 = vsyncpa [#allocation9 + $0x1], 0  ;;  %s1757_s15 = smov 0   ;;  %s1759_s16 = smov 0  }
   0x8   :  { %s1761_s17 = smov 0   ;;  %s1763_s18 = smov 0  }
   0x9   :  { %s1765_s19 = smov 0   ;;  %s1767_s20 = smov 0  }
   0xa   :  { %s1769_s21 = smov 0   ;;  %s1771_s22 = smov 0  }
   0xb   :  { %s1773_s23 = smov 0   ;;  %s1775_s24 = smov 0  }
   0xc   :  { %s1777_s25 = smov 0   ;;  %s1779_s26 = smov 0  }
   0xd   :  { %s1781_s27 = smov 0  }
   0xe LB: > { %2197 = sst [smem:[#allocation13_spill]] %s1693_s22  ;;  %s1144_s28 = sadd.s32 4294967295, %s1713_s27   ;;  %s1713_s27 = sphi %s1781_s27, %s20_s27   ;;  %s1709_s26 = sphi %s1779_s26, %s2229_s26   ;;  %s1705_s25 = sphi %s1777_s25, %s2218_s25   ;;  %s1701_s24 = sphi %s1775_s24, %s2228_s24   ;;  %s1697_s23 = sphi %s1773_s23, %s2227_s23   ;;  %s1693_s22 = sphi %s1771_s22, %s2216_s22   ;;  %s1689_s21 = sphi %s1769_s21, %s2226_s21   ;;  %s1685_s20 = sphi %s1767_s20, %s2225_s20   ;;  %s1681_s19 = sphi %s1765_s19, %s2224_s19   ;;  %s1677_s18 = sphi %s1763_s18, %s2223_s18   ;;  %s1673_s17 = sphi %s1761_s17, %s2222_s17   ;;  %s1669_s16 = sphi %s1759_s16, %s2221_s16   ;;  %s1665_s15 = sphi %s1757_s15, %s2220_s15  }
   0xf   : > { %2198 = sst [smem:[#allocation14_spill]] %s1705_s25  ;;  %s32_s30 = sadd.s32 1, %s1701_s24 }
  0x10   : > { %s35_s5 = sadd.s32 1, %s1705_s25  ;;  %p33_p0 = scmp.ge.s32.totalorder %s32_s30, 2 }
  0x11   : > { %s39_s6 = sadd.s32 1, %s1709_s26  ;;  %s48_s7 = sadd.s32 1, %s1685_s20 }
  0x12   : > { %p55_p1 = scmp.ne.s32.totalorder %s1685_s20, %s1681_s19  ;;  %s2231_s30 = smov (%p33_p0, %s32_s30), 0 }
  0x13   : > { %2199 = sst [smem:[#allocation15_spill]] %s2231_s30  ;;  %s2233_s5 = smov (!%p33_p0, %s35_s5), %s1705_s25 }
  0x14   : > { %p56_p2 = scmp.eq.s32.totalorder %s1713_s27, 0  ;;  %s72_s8 = ssub.s32 %s1701_s24, %s2231_s30 }
  0x15   : > { %p37_p3 = scmp.ge.s32.totalorder %s2233_s5, 2  ;;  %s76_s9 = sadd.s32 1, %s1677_s18 }
  0x16   : > { %p1840_p4 = por %p56_p2, %p55_p1  ;;  %p83_p5 = scmp.ne.s32.totalorder %s1677_s18, %s1673_s17 }
  0x17   : > { %s2235_s5 = smov (%p37_p3, %s2233_s5), 0  ;;  %s2237_s6 = smov (!%p37_p3, %s39_s6), %s1709_s26 }
  0x18   : > { %2201 = sst [smem:[#allocation16_spill]] %s2235_s5  ;;  %s44_s11 = ssub.s32 %s1705_s25, %s2235_s5 }
  0x19   : > { %p1851_p6 = por %p83_p5, %p56_p2  ;;  %p41_p7 = scmp.ge.s32.totalorder %s2237_s6, 2 }
  0x1a   : > { %p89_p8 = scmp.ne.s32.totalorder %s1673_s17, %s1669_s16  ;;  %p90_p9 = scmp.eq.s32.totalorder %s1144_s28, 0 }
  0x1b   : > { %p157_p10 = scmp.eq.s32.totalorder %s1144_s28, 7  ;;  %s2239_s6 = smov (%p41_p7, %s2237_s6), 0 }
  0x1c   : > { %2203 = sst [smem:[#allocation17_spill]] %s2239_s6  ;;  %p1859_p11 = por %p90_p9, %p89_p8 }
  0x1d   : > { %p1866_p12 = por %p157_p10, %p55_p1  ;;  %s43_s29 = ssub.s32 %s1709_s26, %s2239_s6 }
  0x1e   : > { %p162_p13 = scmp.ne.s32.totalorder %s1681_s19, %s1665_s15  ;;  %s45_s5 = sor.u32 %s44_s11, %s43_s29 }
  0x1f   : > { %s2205_s14 = scalar_select %p1866_p12, 1, 0 }
  0x20   : > { %s73_s30 = sor.u32 %s72_s8, %s43_s29  ;;  %p46_p0 = scmp.eq.s32.totalorder %s45_s5, 0 }
  0x21   : > { %p74_p2 = scmp.eq.s32.totalorder %s73_s30, 0  ;;  %s2206_s16 = sadd.s32 4294967294, %s1713_s27  }
  0x22   : > { %p163_p3 = scmp.eq.s32.totalorder %s2206_s16, 7  ;;  %p1147_p1 = scmp.ge.s32.totalorder %s1713_s27, 8 }
  0x23   : > { %s1877_s28 = scalar_select %p46_p0, %s1685_s20, %s48_s7  }
  0x24   : > { %s1880_s4 = scalar_select %p74_p2, %s1677_s18, %s76_s9  }
  0x25   : > { %p1882_p5 = por %p163_p3, %p162_p13  ;;  %185 = sbr.rel (%p1147_p1) target bundleno = 89 (0x59), region = 24 }
  0x27   : > { %s2207_s22 = scalar_select %p1882_p5, 1, 0 }
  0x2c   : > { %188 = sbr.rel (!%p1840_p4) target bundleno = 56 (0x38), region = 28  ;;  %s190_s29 = sand.u32 (%p1840_p4), 1, %s1685_s20  }
  0x2d   : > { %s1149_s30 = sshll.u32 (%p1840_p4), %s1709_s26, 3  ;;  %s1148_s5 = sshll.u32 (%p1840_p4), %s190_s29, 5 }
  0x2e   : > { %s194_s7 = sadd.s32 (%p1840_p4), %s1705_s25, %s1149_s30  ;;  %s2208_s0 = sld [smem:[#allocation18_spill]] (%p1840_p4) }
  0x2f   : > { %s1150_s8 = sshll.u32 (%p1840_p4), %s194_s7, 3  ;;  %s192_s6 = scalar_lea.vmem (%p1840_p4), [#allocation6], %s1148_s5 }
  0x34   : > { %s196_s16 = scalar_lea.vmem %s2208_s0, %s1150_s8 }
  0x35   : > { %v230_v0 = vld [vmem:[%s196_s16] sm:$0xff]  ;;  %v232_v1 = vld [vmem:[%s196_s16 + $0x10] sm:$0xff] }
  0x36   : > { %v234_v2 = vld [vmem:[%s196_s16 + $0x20] sm:$0xff]  ;;  %231 = vst [vmem:[%s192_s6] sm:$0xff] %v230_v0  ;;  %233 = vst [vmem:[%s192_s6 + $0x8] sm:$0xff] %v232_v1  ;;  %v236_v3 = vld [vmem:[%s196_s16 + $0x30] sm:$0xff] }
  0x37   : > { %235 = vst [vmem:[%s192_s6 + $0x10] sm:$0xff] %v234_v2  ;;  %237 = vst [vmem:[%s192_s6 + $0x18] sm:$0xff] %v236_v3 }
  0x38 PF: > { %s244_s10 = sand.u32 1, %s1677_s18   ;;  %s1152_s29 = sshll.u32 %s1709_s26, 3 }
  0x39   : > { %s1151_s30 = sshll.u32 %s244_s10, 5  ;;  %s253_s7 = sadd.s32 %s1701_s24, %s1152_s29 }
  0x3a   : > { %s1153_s9 = sshll.u32 %s253_s7, 7  ;;  %s248_s8 = scalar_lea.vmem [#allocation7], %s1151_s30 }
  0x3b   : > { %s256_s11 = sshll.u32 %s248_s8, 4  ;;  %s2209_s1 = sld [smem:[#allocation19_spill]]  ;;  %s1903_s11 = int_to_ptr.vmem [resolvable:$true] %s256_s11 }
  0x3c   : > { %s1905_s6 = scalar_lea.sflag [#allocation8], %s244_s10 }
  0x41   : > { %s1901_s5 = scalar_lea.hbm %s2209_s1, %s1153_s9  ;;  %s1551_s7 = scalar_lea.hbm %s2209_s1, 2048 }
  0x42   : > { %s1547_s16 = scalar_lea.hbm %s1901_s5, 512  ;;  %p1552_p9 = scmp.lt.u32.totalorder %s1901_s5, %s2209_s1 }
  0x43   : > { %p1548_p4 = scmp.ne.s32.totalorder %s1901_s5, %s1547_s16  ;;  %p1553_p10 = scmp.lt.u32.totalorder %s1551_s7, %s1547_s16 }
  0x44   : > { %p1555_p0 = scmp.lt.u32.totalorder %s1547_s16, %s1901_s5 }
  0x45   : > { %p1549_p7 = pnand %p1548_p4, %p1851_p6  ;;  %p1554_p13 = por %p1553_p10, %p1552_p9 }
  0x47   : > { %p1550_p8 = pneg %p1549_p7  ;;  %p1556_p2 = por %p1555_p0, %p1554_p13 }
  0x49   : > { %p1557_p3 = pnand %p1556_p2, %p1550_p8 }
  0x4b   : > { %1560 = shalt.err (!%p1557_p3)
}
  0x4c   : > { %s1561_s10 = scalar_lea.vmem %s1903_s11, 512  ;;  %s1715_s9 = smov [#allocation7]  }
  0x4d   : > { %p1562_p1 = scmp.ne.s32.totalorder %s1903_s11, %s1561_s10  ;;  %s1565_s8 = sshll.u32 %s1715_s9, 4  ;;  %s1566_s8 = int_to_ptr.vmem [resolvable:$false] %s1565_s8 }
  0x4e   : > { %s1567_s29 = scalar_lea.vmem %s1566_s8, 1024  ;;  %p1568_p5 = scmp.lt.s32.totalorder %s1903_s11, %s1566_s8 }
  0x4f   : > { %p1563_p4 = pnand %p1562_p1, %p1851_p6  ;;  %p1569_p12 = scmp.lt.s32.totalorder %s1567_s29, %s1561_s10 }
  0x51   : > { %p1564_p7 = pneg %p1563_p4  ;;  %p1570_p9 = por %p1569_p12, %p1568_p5 }
  0x53   : > { %p1571_p10 = pnand %p1570_p9, %p1564_p7 }
  0x55   : > { %1574 = shalt.err (!%p1571_p10)
}
  0x56   : > { %s1716_s16 = smov 256   ;;  %s1717_s30 = smov 128  }
  0x57   : > { %s1718_s7 = smov 8  }
  0x58   : > { %1380 = dma.hbm_to_vmem [thread:$0]  (%p1851_p6), %s1901_s5, 512, %s1903_s11, %s1905_s6, %s1716_s16, %s1717_s30, %s1718_s7  }
  0x59 PF: > { %p1154_p8 = scmp.ge.s32.totalorder %s1713_s27, 1  ;;  %p264_p13 = scmp.lt.s32.totalorder %s1713_s27, 9 }
  0x5b   : > { %p265_p0 = pnand %p1154_p8, %p264_p13 }
  0x5c   : > { %s2193_s0 = sand.u32 (!%p265_p0), 1, %s1681_s19   ;;  %s277_s25 = sand.u32 (!%p265_p0), 1, %s1673_s17  }
  0x5d   : > { %268 = sbr.rel (%p265_p0) target bundleno = 1291 (0x50b), region = 70  ;;  %s1155_s10 = sshll.u32 (!%p265_p0), %s2193_s0, 5 }
  0x5e   : > { %s1156_s9 = sshll.u32 (!%p265_p0), %s277_s25, 5  ;;  %s273_s8 = scalar_lea.vmem (!%p265_p0), [#allocation6], %s1155_s10 }
  0x5f   : > { %s278_s29 = scalar_lea.sflag (!%p265_p0), [#allocation8], %s277_s25  ;;  %s1935_s12 = scalar_lea.vmem (!%p265_p0), [#allocation7], %s1156_s9 }
  0x64   : > { %1656 = dma.done.wait (%p1859_p11), %s278_s29, 512  }
  0x65   : > { %1658 = vsyncadd (%p1859_p11), %s278_s29, 4294966784  ;;  %v310_v4 = vld [vmem:[%s2184_s2] sm:$0xff]  ;;  %v1947_v5 = vld [vmem:[%s2184_s2 + $0x8] sm:$0xff]  ;;  %s1987_s6 = scalar_lea.vmem [#allocation10], %s1155_s10  ;;  %p1158_p6 = scmp.ne.s32.totalorder %s1689_s21, 0 }
  0x66   : > { %v1952_v6 = vld [vmem:[%s2184_s2 + $0x10] sm:$0xff]  ;;  %v1957_v7 = vld [vmem:[%s2184_s2 + $0x18] sm:$0xff]  ;;  %v1962_v8 = vld [vmem:[%s2184_s2 + $0x20] sm:$0xff]  ;;  %v1719_v19 = vmov (!%p1158_p6), -inf   ;;  %v1720_v20 = vmov (!%p1158_p6), 0.0|0.0   ;;  %v1721_v23 = vmov (!%p1158_p6), 0.0  }
  0x67   : > { %v1967_v9 = vld [vmem:[%s2184_s2 + $0x28] sm:$0xff]  ;;  %v316_v10 = vld [vmem:[%s2185_s3] sm:$0xff]  ;;  %v318_v12 = vld [vmem:[%s2185_s3 + $0x10] sm:$0xff]  ;;  %325 = sbr.rel (%p1158_p6) target bundleno = 331 (0x14b), region = 82  ;;  %326 = vst [vmem:[#allocation3] sm:$0x1] (!%p1158_p6), %v1719_v19  ;;  %1336 = vmatprep.subr.bf16.mxu0 (!%p1158_p6), %v1720_v20 }
  0x68   : > { %v317_v11 = vld [vmem:[%s2185_s3 + $0x8] sm:$0xff]  ;;  %v319_v13 = vld [vmem:[%s2185_s3 + $0x18] sm:$0xff]  ;;  %v320_v14 = vld [vmem:[%s2185_s3 + $0x20] sm:$0xff]  ;;  %327 = vst [vmem:[#allocation4] sm:$0x1] (!%p1158_p6), %v1721_v23  ;;  %vm1722_vm0 = vmmov (!%p1158_p6), 0  }
  0x69   : > { %v321_v15 = vld [vmem:[%s2185_s3 + $0x28] sm:$0xff]  ;;  %v333_v17 = vld [vmem:[%s273_s8 + $0x8] sm:$0xff] (!%p1158_p6)  ;;  %v334_v18 = vld [vmem:[%s273_s8 + $0x10] sm:$0xff] (!%p1158_p6)  ;;  %328 = vst [vmem:[#allocation5] sm:$0xff] (!%p1158_p6), %v1721_v23  ;;  %1246 = vmatprep.mubr.msk.f32.mxu0 (!%p1158_p6), %vm1722_vm0, %v1721_v23  ;;  %v1723_v24 = vmov (!%p1158_p6), 0   ;;  %vm341_vm1 = vcmask (!%p1158_p6), 261120  }
  0x6a   : > { %v332_v16 = vld [vmem:[%s273_s8] sm:$0xff] (!%p1158_p6)  ;;  %v335_v22 = vld [vmem:[%s273_s8 + $0x18] sm:$0xff] (!%p1158_p6)  ;;  %329 = vst [vmem:[#allocation5 + $0x8] sm:$0xff] (!%p1158_p6), %v1721_v23  ;;  %330 = vst [vmem:[#allocation5 + $0x10] sm:$0xff] (!%p1158_p6), %v1721_v23  ;;  %1508 = vset.pattern.permute.xlu0 (!%p1158_p6), %v1723_v24 }
  0x6b   : > { %v1337_v21 = vpack.c.bf16 (!%p1158_p6), %v333_v17, %v332_v16  ;;  %331 = vst [vmem:[#allocation5 + $0x18] sm:$0xff] (!%p1158_p6), %v1721_v23  ;;  %v1340_v25 = vpack.c.bf16 (!%p1158_p6), %v335_v22, %v334_v18  ;;  %338 = vperm.xlu0 (!%p1158_p6), %1508, %v316_v10  }
  0x6d   : > { %1338 = vmatpush3.bf16.msra.mxu0 (!%p1158_p6), %v1337_v21 }
  0x6e   : > { %1339 = vmatprep.subr.bf16.mxu0 %v1720_v20 }
  0x71   : > { %1341 = vmatpush3.bf16.msra.mxu0 %v1340_v25 }
  0x74   : > { %1247 = vmatmul.mubr.msk.f32.vlgmr.msra.gmra.mrb[0].mxu0 %vm341_vm1, %v310_v4 }
  0xea   : > { %v339_v26 = vpop.permute.xlu0 %338 }
 0x147   : > { %v411_v27 = vpop.f32.mrb[0].mxu0 }
 0x148   : > { %v412_v28 = vadd.f32 %v411_v27, %v339_v26  ;;  %v1248_v29 = vpop.f32.mrb[1].mxu0 }
 0x14a   : > { %415 = vst [vmem:[#allocation2] sm:$0xff] %v412_v28 }
 0x14b PF: > { %v416_v30 = vld [vmem:[%s1935_s12] sm:$0xff]  ;;  %v417_v31 = vld [vmem:[%s1935_s12 + $0x8] sm:$0xff]  ;;  %v418_v32 = vld [vmem:[%s1935_s12 + $0x10] sm:$0xff]  ;;  %v1724_v33 = vmov 0.0|0.0   ;;  %vm1725_vm2 = vmmov 0   ;;  %v1726_v36 = vmov 0.0  }
 0x14c   : > { %1342 = vmatprep.subr.bf16.mxu0 %v1724_v33  ;;  %v1343_v34 = vpack.c.bf16 %v417_v31, %v416_v30  ;;  %v419_v35 = vld [vmem:[%s1935_s12 + $0x18] sm:$0xff]  ;;  %1257 = vmatprep.mubr.msk.f32.mxu0 %vm1725_vm2, %v1726_v36  ;;  %v1727_v37 = vmov 0   ;;  %vm445_vm3 = vcmask 261120   ;;  %vm584_vm4 = vcmask 64512   ;;  %p1181_p11 = scmp.ne.s32.totalorder %s1689_s21, 1 }
 0x14d   : > { %1509 = vset.pattern.permute.xlu0 %v1727_v37  ;;  %1510 = vset.pattern.permute.xlu1 %v1727_v37  ;;  %v1346_v38 = vpack.c.bf16 %v419_v35, %v418_v32 }
 0x14e   : > { %1344 = vmatpush3.bf16.msra.mxu0 %v1343_v34  ;;  %422 = vperm.xlu0 %1509, %v317_v11  }
 0x14f   : > { %1345 = vmatprep.subr.bf16.mxu0 %v1724_v33  ;;  %427 = vperm.xlu1 %1510, %v318_v12  }
 0x151   : > { %v551_v43 = vld [vmem:[#allocation2] sm:$0xff] }
 0x152   : > { %1347 = vmatpush3.bf16.msra.mxu0 %v1346_v38  ;;  %1272 = vmatprep.subr.mxu1 %v551_v43 }
 0x153   : > { %432 = vperm.xlu1 %1510, %v319_v13   ;;  %1273 = vmatpush3.msra.mxu1 %v551_v43 }
 0x155   : > { %1258 = vmatmul.mubr.msk.f32.vlgmr.msra.gmra.mrb[0].mxu0 %vm445_vm3, %v1947_v5 }
 0x156   : > { %1260 = vmatprep.mubr.msk.f32.mxu0 %vm1725_vm2, %v1726_v36 }
 0x157   : > { %437 = vperm.xlu1 %1510, %v320_v14  }
 0x159   : > { %1261 = vmatmul.mubr.msk.f32.gmra.mrb[2].mxu0 %vm445_vm3, %v1952_v6 }
 0x15a   : > { %1263 = vmatprep.mubr.msk.f32.mxu0 %vm1725_vm2, %v1726_v36 }
 0x15b   : > { %442 = vperm.xlu1 %1510, %v321_v15  }
 0x15d   : > { %1264 = vmatmul.mubr.msk.f32.gmra.mrb[4].mxu0 %vm445_vm3, %v1957_v7 }
 0x15e   : > { %1266 = vmatprep.mubr.msk.f32.mxu0 %vm1725_vm2, %v1726_v36 }
 0x161   : > { %1267 = vmatmul.mubr.msk.f32.gmra.mrb[6].mxu0 %vm445_vm3, %v1962_v8 }
 0x162   : > { %1269 = vmatprep.mubr.msk.f32.mxu0 %vm1725_vm2, %v1726_v36 }
 0x165   : > { %1270 = vmatmul.mubr.msk.f32.gmra.mrb[8].mxu0 %vm445_vm3, %v1967_v9 }
 0x1cd   : > { %v423_v39 = vpop.permute.xlu0 %422 }
 0x1ce   : > { %v428_v60 = vpop.permute.xlu1 %427 }
 0x228   : > { %v527_v40 = vpop.f32.mrb[0].mxu0 }
 0x229   : > { %v528_v41 = vadd.f32 %v527_v40, %v423_v39  ;;  %v1259_v42 = vpop.f32.mrb[1].mxu0  ;;  %v805_v39 = vlaneseq }
 0x22b   : > { %552 = vxpose.xlu0.b32.start.end [1/1] (short) %v528_v41, 128  ;;  %v806_v42 = vshrl.u32 %v805_v39, 7 }
 0x22c   : > { %v532_v61 = vpop.f32.mrb[2].mxu0 }
 0x22d   : > { %v533_v62 = vadd.f32 %v532_v61, %v428_v60  ;;  %v1262_v63 = vpop.f32.mrb[3].mxu0 }
 0x230   : > { %v2020_v0 = vpop.f32.mrb[4].mxu0 }
 0x231   : > { %v1265_v1 = vpop.f32.mrb[5].mxu0 }
 0x234   : > { %v2024_v3 = vpop.f32.mrb[6].mxu0 }
 0x235   : > { %v1268_v5 = vpop.f32.mrb[7].mxu0 }
 0x238   : > { %v2028_v6 = vpop.f32.mrb[8].mxu0 }
 0x239   : > { %v1271_v7 = vpop.f32.mrb[9].mxu0 }
 0x2ab   : > { %v568_v44 = vpop.trf.xlu0 }
 0x2ac   : > { %1274 = vmatprep.mubr.msk.f32.mxu1 %vm584_vm4, %v568_v44  ;;  %v799_v44 = vld [vmem:[#allocation3] sm:$0x1] }
 0x2af   : > { %v569_v45 = vpop.trf.xlu0 }
 0x2b0   : > { %1275 = vmatmul.mubr.msk.f32.vlgmr.msra.gmra.mrb[0].mxu1 %vm584_vm4, %v569_v45 }
 0x2b3   : > { %v570_v46 = vpop.trf.xlu0 }
 0x2b4   : > { %1277 = vmatprep.mubr.msk.f32.mxu1 %vm584_vm4, %v570_v46  ;;  %v2062_v46 = vsub.s32 0, %v806_v42 }
 0x2b7   : > { %v571_v47 = vpop.trf.xlu0 }
 0x2b8   : > { %1278 = vmatmul.mubr.msk.f32.gmra.mrb[2].mxu1 %vm584_vm4, %v571_v47 }
 0x2bb   : > { %v572_v48 = vpop.trf.xlu0 }
 0x2bc   : > { %1280 = vmatprep.mubr.msk.f32.mxu1 %vm584_vm4, %v572_v48 }
 0x2bf   : > { %v573_v49 = vpop.trf.xlu0 }
 0x2c0   : > { %1281 = vmatmul.mubr.msk.f32.gmra.mrb[4].mxu1 %vm584_vm4, %v573_v49 }
 0x2c3   : > { %v574_v50 = vpop.trf.xlu0 }
 0x2c4   : > { %1283 = vmatprep.mubr.msk.f32.mxu1 %vm584_vm4, %v574_v50 }
 0x2c7   : > { %v575_v51 = vpop.trf.xlu0 }
 0x2c8   : > { %1284 = vmatmul.mubr.msk.f32.gmra.mrb[6].mxu1 %vm584_vm4, %v575_v51 }
 0x2cb   : > { %v576_v52 = vpop.trf.xlu0 }
 0x2cc   : > { %1286 = vmatprep.mubr.msk.f32.mxu1 %vm584_vm4, %v576_v52 }
 0x2cf   : > { %v577_v53 = vpop.trf.xlu0 }
 0x2d0   : > { %1287 = vmatmul.mubr.msk.f32.gmra.mrb[8].mxu1 %vm584_vm4, %v577_v53 }
 0x2d3   : > { %v578_v54 = vpop.trf.xlu0 }
 0x2d4   : > { %1289 = vmatprep.mubr.msk.f32.mxu1 %vm584_vm4, %v578_v54 }
 0x2d7   : > { %v579_v55 = vpop.trf.xlu0 }
 0x2d8   : > { %1290 = vmatmul.mubr.msk.f32.gmra.mrb[10].mxu1 %vm584_vm4, %v579_v55 }
 0x2db   : > { %v580_v56 = vpop.trf.xlu0 }
 0x2dc   : > { %1292 = vmatprep.mubr.msk.f32.mxu1 %vm584_vm4, %v580_v56 }
 0x2df   : > { %v581_v57 = vpop.trf.xlu0 }
 0x2e0   : > { %1293 = vmatmul.mubr.msk.f32.gmra.mrb[12].mxu1 %vm584_vm4, %v581_v57 }
 0x2e3   : > { %v582_v58 = vpop.trf.xlu0 }
 0x2e4   : > { %1295 = vmatprep.mubr.msk.f32.mxu1 %vm584_vm4, %v582_v58 }
 0x2e7   : > { %v583_v59 = vpop.trf.xlu0 }
 0x2e8   : > { %1296 = vmatmul.mubr.msk.f32.gmra.mrb[14].mxu1 %vm584_vm4, %v583_v59 }
 0x2e9   : > { %1330 = vmatprep.mubr.f32.mxu1 %v533_v62 }
 0x383   : > { %v2022_v2 = vpop.f32.mrb[0].mxu1 }
 0x384   : > { %v2026_v4 = vpop.f32.mrb[1].mxu1 }
 0x38b   : > { %v2030_v8 = vpop.f32.mrb[2].mxu1 }
 0x38c   : > { %v709_v9 = vpop.f32.mrb[3].mxu1 }
 0x393   : > { %v2032_v10 = vpop.f32.mrb[4].mxu1 }
 0x394   : > { %v779_v11 = vmax.f32 %v2022_v2, %v2032_v10  ;;  %v719_v12 = vpop.f32.mrb[5].mxu1 }
 0x395   : > { %v778_v13 = vmax.f32 %v2026_v4, %v719_v12 }
 0x39b   : > { %v2037_v14 = vpop.f32.mrb[6].mxu1 }
 0x39c   : > { %v781_v15 = vmax.f32 %v2030_v8, %v2037_v14  ;;  %v729_v16 = vpop.f32.mrb[7].mxu1 }
 0x39d   : > { %v780_v17 = vmax.f32 %v709_v9, %v729_v16 }
 0x3a3   : > { %v2041_v18 = vpop.f32.mrb[8].mxu1 }
 0x3a4   : > { %v783_v19 = vmax.f32 %v779_v11, %v2041_v18  ;;  %v739_v20 = vpop.f32.mrb[9].mxu1 }
 0x3a5   : > { %v782_v21 = vmax.f32 %v778_v13, %v739_v20 }
 0x3ab   : > { %v2044_v22 = vpop.f32.mrb[10].mxu1 }
 0x3ac   : > { %v785_v23 = vmax.f32 %v781_v15, %v2044_v22  ;;  %v2047_v24 = vpop.f32.mrb[11].mxu1 }
 0x3ad   : > { %v784_v25 = vmax.f32 %v780_v17, %v2047_v24 }
 0x3b3   : > { %v2050_v26 = vpop.f32.mrb[12].mxu1 }
 0x3b4   : > { %v787_v27 = vmax.f32 %v783_v19, %v2050_v26  ;;  %v2053_v28 = vpop.f32.mrb[13].mxu1 }
 0x3b5   : > { %v786_v29 = vmax.f32 %v782_v21, %v2053_v28 }
 0x3b7   : > { %v790_v30 = vmax.f32 %v786_v29, %v787_v27 }
 0x3bb   : > { %v2056_v31 = vpop.f32.mrb[14].mxu1 }
 0x3bc   : > { %v789_v32 = vmax.f32 %v785_v23, %v2056_v31  ;;  %v2059_v33 = vpop.f32.mrb[15].mxu1 }
 0x3bd   : > { %v788_v34 = vmax.f32 %v784_v25, %v2059_v33 }
 0x3bf   : > { %v791_v35 = vmax.f32 %v788_v34, %v789_v32 }
 0x3c1   : > { %v792_v36 = vmax.f32 %v790_v30, %v791_v35 }
 0x3c3   : > { %v793_v37 = vrot.slane %v792_v36, 4 }
 0x3c5   : > { %v794_v38 = vmax.f32 %v792_v36, %v793_v37 }
 0x3c7   : > { %v795_v40 = vrot.slane %v794_v38, 2 }
 0x3c9   : > { %v796_v41 = vmax.f32 %v794_v38, %v795_v40 }
 0x3cb   : > { %v797_v43 = vrot.slane %v796_v41, 1 }
 0x3cd   : > { %v798_v45 = vmax.f32 %v796_v41, %v797_v43 }
 0x3cf   : > { %v800_v47 = vmax.f32 %v799_v44, %v798_v45 }
 0x3d1   : > { %v801_v48 = vsub.f32 %v799_v44, %v800_v47  ;;  %v808_v49 = vrot.slane %v800_v47, %v2062_v46  ;;  %990 = vst [vmem:[#allocation3] sm:$0x1] %v800_v47 }
 0x3d3   : > { %v802_v50 = vmul.f32 1.442695, %v801_v48  ;;  %v810_v51 = vsub.f32 %v2026_v4, %v808_v49  ;;  %v811_v52 = vsub.f32 %v2022_v2, %v808_v49  ;;  %v812_v53 = vsub.f32 %v709_v9, %v808_v49 }
 0x3d4   : > { %v813_v54 = vsub.f32 %v2030_v8, %v808_v49  ;;  %v814_v55 = vsub.f32 %v719_v12, %v808_v49  ;;  %v815_v56 = vsub.f32 %v2032_v10, %v808_v49  ;;  %v816_v57 = vsub.f32 %v729_v16, %v808_v49 }
 0x3d5   : > { %1511 = vpow2.f32 %v802_v50  ;;  %v817_v58 = vsub.f32 %v2037_v14, %v808_v49  ;;  %v818_v59 = vsub.f32 %v739_v20, %v808_v49  ;;  %v819_v60 = vsub.f32 %v2041_v18, %v808_v49 }
 0x3d6   : > { %v820_v61 = vsub.f32 %v2047_v24, %v808_v49  ;;  %v821_v62 = vsub.f32 %v2044_v22, %v808_v49  ;;  %v822_v63 = vsub.f32 %v2053_v28, %v808_v49  ;;  %v823_v1 = vsub.f32 %v2050_v26, %v808_v49 }
 0x3d7   : > { %v824_v2 = vsub.f32 %v2059_v33, %v808_v49  ;;  %v826_v4 = vmul.f32 1.442695, %v810_v51  ;;  %v828_v5 = vmul.f32 1.442695, %v811_v52  ;;  %v830_v7 = vmul.f32 1.442695, %v812_v53 }
 0x3d8   : > { %v832_v8 = vmul.f32 1.442695, %v813_v54  ;;  %v825_v9 = vsub.f32 %v2056_v31, %v808_v49  ;;  %v834_v10 = vmul.f32 1.442695, %v814_v55  ;;  %v836_v11 = vmul.f32 1.442695, %v815_v56 }
 0x3d9   : > { %1513 = vpow2.f32 %v826_v4  ;;  %v838_v12 = vmul.f32 1.442695, %v816_v57  ;;  %v840_v13 = vmul.f32 1.442695, %v817_v58  ;;  %v842_v14 = vmul.f32 1.442695, %v818_v59 }
 0x3da   : > { %1515 = vpow2.f32 %v828_v5  ;;  %v844_v15 = vmul.f32 1.442695, %v819_v60  ;;  %v846_v17 = vmul.f32 1.442695, %v820_v61  ;;  %v848_v18 = vmul.f32 1.442695, %v821_v62  ;;  %v433_v60 = vpop.permute.xlu1 %432 }
 0x3db   : > { %1517 = vpow2.f32 %v830_v7  ;;  %v850_v20 = vmul.f32 1.442695, %v822_v63  ;;  %v852_v21 = vmul.f32 1.442695, %v823_v1  ;;  %v854_v23 = vmul.f32 1.442695, %v824_v2 }
 0x3dc   : > { %1519 = vpow2.f32 %v832_v8  ;;  %v856_v25 = vmul.f32 1.442695, %v825_v9  ;;  %v538_v5 = vadd.f32 %v2020_v0, %v433_v60  ;;  %v883_v0 = vld [vmem:[#allocation5] sm:$0xff] }
 0x3dd   : > { %1521 = vpow2.f32 %v834_v10 }
 0x3de   : > { %1523 = vpow2.f32 %v836_v11  ;;  %v438_v1 = vpop.permute.xlu1 %437 }
 0x3df   : > { %v2077_v16 = vpop.eup %1511  ;;  %1525 = vpow2.f32 %v838_v12  ;;  %v543_v8 = vadd.f32 %v2024_v3, %v438_v1 }
 0x3e0   : > { %1527 = vpow2.f32 %v840_v13  ;;  %v2081_v19 = vrot.slane %v2077_v16, %v2062_v46  ;;  %v858_v13 = vld [vmem:[#allocation4] sm:$0x1] }
 0x3e1   : > { %1529 = vpow2.f32 %v842_v14 }
 0x3e2   : > { %1531 = vpow2.f32 %v844_v15  ;;  %v443_v9 = vpop.permute.xlu1 %442  ;;  %v859_v15 = vmul.f32 %v2077_v16, %v858_v13 }
 0x3e3   : > { %v1514_v22 = vpop.eup %1513  ;;  %1533 = vpow2.f32 %v846_v17  ;;  %v548_v11 = vadd.f32 %v2028_v6, %v443_v9  ;;  %v885_v6 = vld [vmem:[#allocation5 + $0x10] sm:$0xff] }
 0x3e4   : > { %v1516_v24 = vpop.eup %1515  ;;  %1535 = vpow2.f32 %v848_v18 }
 0x3e5   : > { %v1518_v26 = vpop.eup %1517  ;;  %1537 = vpow2.f32 %v850_v20  ;;  %v860_v27 = vadd.f32 %v1516_v24, %v1514_v22  ;;  %v1348_v28 = vpack.c.bf16 %v1516_v24, %v1514_v22  ;;  %v884_v20 = vld [vmem:[#allocation5 + $0x8] sm:$0xff]  ;;  %v893_v22 = vmul.f32 %v2081_v19, %v883_v0 }
 0x3e6   : > { %v1520_v29 = vpop.eup %1519  ;;  %1539 = vpow2.f32 %v852_v21  ;;  %v894_v21 = vmul.f32 %v2081_v19, %v884_v20 }
 0x3e7   : > { %v1522_v30 = vpop.eup %1521  ;;  %1541 = vpow2.f32 %v854_v23  ;;  %v861_v31 = vadd.f32 %v1518_v26, %v860_v27  ;;  %1349 = vmatprep.subr.bf16.mxu1 %v1348_v28  ;;  %v1352_v32 = vpack.c.bf16 %v1520_v29, %v1518_v26  ;;  %v886_v23 = vld [vmem:[#allocation5 + $0x18] sm:$0xff] }
 0x3e8   : > { %v1524_v33 = vpop.eup %1523  ;;  %1351 = vmatpush3.bf16.msra.mxu1 %v1348_v28  ;;  %1543 = vpow2.f32 %v856_v25  ;;  %v896_v27 = vmul.f32 %v2081_v19, %v886_v23  ;;  %v895_v28 = vmul.f32 %v2081_v19, %v885_v6 }
 0x3e9   : > { %v1526_v34 = vpop.eup %1525  ;;  %v862_v35 = vadd.f32 %v1520_v29, %v861_v31  ;;  %1353 = vmatprep.subr.bf16.mxu1 %v1352_v32  ;;  %v1356_v36 = vpack.c.bf16 %v1524_v33, %v1522_v30 }
 0x3ea   : > { %v1528_v37 = vpop.eup %1527 }
 0x3eb   : > { %v1530_v38 = vpop.eup %1529  ;;  %v863_v39 = vadd.f32 %v1522_v30, %v862_v35  ;;  %v1360_v40 = vpack.c.bf16 %v1528_v37, %v1526_v34 }
 0x3ec   : > { %v1532_v41 = vpop.eup %1531  ;;  %1355 = vmatpush3.bf16.msra.mxu1 %v1352_v32 }
 0x3ed   : > { %v1534_v42 = vpop.eup %1533  ;;  %v864_v43 = vadd.f32 %v1524_v33, %v863_v39  ;;  %1357 = vmatprep.subr.bf16.mxu1 %v1356_v36  ;;  %v1364_v44 = vpack.c.bf16 %v1532_v41, %v1530_v38 }
 0x3ee   : > { %v1536_v45 = vpop.eup %1535 }
 0x3ef   : > { %v1538_v47 = vpop.eup %1537  ;;  %v865_v48 = vadd.f32 %v1526_v34, %v864_v43  ;;  %v1368_v49 = vpack.c.bf16 %v1536_v45, %v1534_v42 }
 0x3f0   : > { %v1540_v50 = vpop.eup %1539  ;;  %1359 = vmatpush3.bf16.msra.mxu1 %v1356_v36 }
 0x3f1   : > { %v1542_v51 = vpop.eup %1541  ;;  %v866_v52 = vadd.f32 %v1528_v37, %v865_v48  ;;  %1361 = vmatprep.subr.bf16.mxu1 %v1360_v40  ;;  %v1372_v53 = vpack.c.bf16 %v1540_v50, %v1538_v47 }
 0x3f2   : > { %v1544_v54 = vpop.eup %1543 }
 0x3f3   : > { %v867_v55 = vadd.f32 %v1530_v38, %v866_v52  ;;  %v1376_v56 = vpack.c.bf16 %v1544_v54, %v1542_v51 }
 0x3f4   : > { %1363 = vmatpush3.bf16.msra.mxu1 %v1360_v40 }
 0x3f5   : > { %v868_v57 = vadd.f32 %v1532_v41, %v867_v55  ;;  %1365 = vmatprep.subr.bf16.mxu1 %v1364_v44 }
 0x3f7   : > { %v869_v58 = vadd.f32 %v1534_v42, %v868_v57 }
 0x3f8   : > { %1367 = vmatpush3.bf16.msra.mxu1 %v1364_v44 }
 0x3f9   : > { %v870_v59 = vadd.f32 %v1536_v45, %v869_v58  ;;  %1369 = vmatprep.subr.bf16.mxu1 %v1368_v49 }
 0x3fb   : > { %v871_v61 = vadd.f32 %v1538_v47, %v870_v59 }
 0x3fc   : > { %1371 = vmatpush3.bf16.msra.mxu1 %v1368_v49 }
 0x3fd   : > { %v872_v62 = vadd.f32 %v1540_v50, %v871_v61  ;;  %1373 = vmatprep.subr.bf16.mxu1 %v1372_v53 }
 0x3ff   : > { %v873_v63 = vadd.f32 %v1542_v51, %v872_v62 }
 0x400   : > { %1375 = vmatpush3.bf16.msra.mxu1 %v1372_v53 }
 0x401   : > { %v874_v2 = vadd.f32 %v1544_v54, %v873_v63  ;;  %1377 = vmatprep.subr.bf16.mxu1 %v1376_v56 }
 0x403   : > { %v875_v4 = vrot.slane %v874_v2, 4 }
 0x404   : > { %1379 = vmatpush3.bf16.msra.mxu1 %v1376_v56 }
 0x405   : > { %v876_v7 = vadd.f32 %v875_v4, %v874_v2 }
 0x407   : > { %v877_v10 = vrot.slane %v876_v7, 2  ;;  %1331 = vmatmul.mubr.f32.vlgmr.msra.gmra.mrb[16].mxu1 %v538_v5 }
 0x408   : > { %1333 = vmatprep.mubr.f32.mxu1 %v543_v8 }
 0x409   : > { %v878_v12 = vadd.f32 %v877_v10, %v876_v7 }
 0x40b   : > { %v879_v14 = vrot.slane %v878_v12, 1  ;;  %1334 = vmatmul.mubr.f32.gmra.mrb[18].mxu1 %v548_v11 }
 0x40d   : > { %v880_v17 = vadd.f32 %v879_v14, %v878_v12 }
 0x40f   : > { %v881_v18 = vadd.f32 %v880_v17, %v859_v15 }
 0x411   : > { %882 = vst [vmem:[#allocation4] sm:$0x1] %v881_v18 }
 0x418   : > { %v999_v32 = vld [vmem:[#allocation4] sm:$0x1] (!%p1181_p11) }
 0x419   : > { %1545 = vrcp.f32 (!%p1181_p11), %v999_v32 }
 0x423   : > { %v1546_v34 = vpop.eup (!%p1181_p11), %1545 }
 0x424   : > { %v1005_v19 = vrot.slane (!%p1181_p11), %v1546_v34, %v2062_v46 }
 0x4da   : > { %v1332_v3 = vpop.f32.mrb[16].mxu1 }
 0x4db   : > { %v983_v24 = vadd.f32 %v1332_v3, %v894_v21  ;;  %v963_v25 = vpop.f32.mrb[17].mxu1 }
 0x4dc   : > { %v982_v26 = vadd.f32 %v963_v25, %v893_v22  ;;  %994 = sbr.rel (%p1181_p11) target bundleno = 1261 (0x4ed), region = 86 }
 0x4dd   : > { %987 = vst [vmem:[#allocation5 + $0x8] sm:$0xff] %v983_v24 }
 0x4de   : > { %986 = vst [vmem:[#allocation5] sm:$0xff] %v982_v26  ;;  %v1335_v16 = vpop.f32.mrb[18].mxu1 }
 0x4df   : > { %v985_v29 = vadd.f32 %v1335_v16, %v896_v27  ;;  %v973_v30 = vpop.f32.mrb[19].mxu1 }
 0x4e0   : > { %v984_v31 = vadd.f32 %v973_v30, %v895_v28 }
 0x4e1   : > { %989 = vst [vmem:[#allocation5 + $0x18] sm:$0xff] %v985_v29 }
 0x4e2   : > { %988 = vst [vmem:[#allocation5 + $0x10] sm:$0xff] %v984_v31 }
 0x4e4   : > { %v996_v35 = vld [vmem:[#allocation5 + $0x8] sm:$0xff] }
 0x4e5   : > { %v995_v33 = vld [vmem:[#allocation5] sm:$0xff]  ;;  %v1008_v39 = vmul.f32 %v1005_v19, %v996_v35 }
 0x4e6   : > { %v1007_v38 = vmul.f32 %v1005_v19, %v995_v33 }
 0x4e7   : > { %1012 = vst [vmem:[%s1987_s6 + $0x8] sm:$0xff] %v1008_v39 }
 0x4e8   : > { %v998_v37 = vld [vmem:[#allocation5 + $0x18] sm:$0xff]  ;;  %1011 = vst [vmem:[%s1987_s6] sm:$0xff] %v1007_v38 }
 0x4e9   : > { %v997_v36 = vld [vmem:[#allocation5 + $0x10] sm:$0xff]  ;;  %v1010_v41 = vmul.f32 %v1005_v19, %v998_v37 }
 0x4ea   : > { %v1009_v40 = vmul.f32 %v1005_v19, %v997_v36 }
 0x4eb   : > { %1014 = vst [vmem:[%s1987_s6 + $0x18] sm:$0xff] %v1010_v41 }
 0x4ec   : > { %1013 = vst [vmem:[%s1987_s6 + $0x10] sm:$0xff] %v1009_v40 }
 0x4ed PF: > { %s2210_s1 = sld [smem:[#allocation13_spill]]  ;;  %s1183_s21 = sshll.u32 %s1697_s23, 3 }
 0x4ee   : > { %s1030_s10 = sshll.u32 %s1987_s6, 4  ;;  %s2211_s30 = sld [smem:[#allocation20_spill]]  ;;  %s2100_s10 = int_to_ptr.vmem [resolvable:$true] %s1030_s10 }
 0x4ef   : > { %s2212_s25 = sand.u32 1, %s1681_s19   ;;  %s1575_s13 = scalar_lea.vmem %s2100_s10, 512 }
 0x4f0   : > { %s2109_s9 = scalar_lea.sflag [#allocation9], %s2212_s25  ;;  %p1576_p12 = scmp.ne.s32.totalorder %s2100_s10, %s1575_s13 }
 0x4f1   : > { %p2213_p5 = scmp.ne.s32.totalorder %s2205_s14, 0  ;;  %s1728_s23 = smov [#allocation10]  }
 0x4f2   : > { %s1579_s29 = sshll.u32 %s1728_s23, 4  ;;  %s1580_s29 = int_to_ptr.vmem [resolvable:$false] %s1579_s29 }
 0x4f3   : > { %s1027_s0 = sadd.s32 %s2210_s1, %s1183_s21  ;;  %p1577_p2 = pnand %p1576_p12, %p2213_p5 }
 0x4f4   : > { %s1184_s8 = sshll.u32 %s1027_s0, 7  ;;  %s1581_s11 = scalar_lea.vmem %s1580_s29, 1024 }
 0x4f5   : > { %s2105_s7 = scalar_lea.hbm %s2211_s30, %s1184_s8  ;;  %p1578_p3 = pneg %p1577_p2 }
 0x4f6   : > { %p1582_p1 = scmp.lt.s32.totalorder %s2100_s10, %s1580_s29  ;;  %p1583_p4 = scmp.lt.s32.totalorder %s1581_s11, %s1575_s13 }
 0x4f8   : > { %p1584_p7 = por %p1583_p4, %p1582_p1 }
 0x4fa   : > { %p1585_p9 = pnand %p1584_p7, %p1578_p3 }
 0x4fc   : > { %1588 = shalt.err (!%p1585_p9)
}
 0x4fd   : > { %s1589_s5 = scalar_lea.hbm %s2105_s7, 512  ;;  %s1593_s21 = scalar_lea.hbm %s2211_s30, 2048 }
 0x4fe   : > { %p1590_p10 = scmp.ne.s32.totalorder %s2105_s7, %s1589_s5  ;;  %p1594_p0 = scmp.lt.u32.totalorder %s2105_s7, %s2211_s30 }
 0x4ff   : > { %p1595_p6 = scmp.lt.u32.totalorder %s1593_s21, %s1589_s5  ;;  %p1597_p12 = scmp.lt.u32.totalorder %s1589_s5, %s2105_s7 }
 0x500   : > { %p1591_p8 = pnand %p1590_p10, %p2213_p5 }
 0x501   : > { %p1596_p11 = por %p1595_p6, %p1594_p0 }
 0x502   : > { %p1592_p13 = pneg %p1591_p8 }
 0x503   : > { %p1598_p2 = por %p1597_p12, %p1596_p11 }
 0x505   : > { %p1599_p3 = pnand %p1598_p2, %p1592_p13 }
 0x507   : > { %1602 = shalt.err (!%p1599_p3)
}
 0x508   : > { %s1729_s12 = smov 128   ;;  %s1730_s16 = smov 256  }
 0x509   : > { %s1731_s25 = smov 8  }
 0x50a   : > { %1382 = dma.vmem_to_hbm [thread:$0]  (%p2213_p5), %s2100_s10, 512, %s2105_s7, %s2109_s9, %s1729_s12, %s1730_s16, %s1731_s25  }
 0x50b PF: > { %p1388_p1 = scmp.ge.s32.totalorder %s1713_s27, 2  ;;  %s1045_s13 = sand.u32 1, %s1665_s15  }
 0x50c   : > { %p2214_p4 = scmp.ne.s32.totalorder %s2207_s22, 0  ;;  %s1046_s23 = scalar_lea.sflag [#allocation9], %s1045_s13 }
 0x50e   : > { %p1385_p7 = pnand %p1388_p1, %p2214_p4 }
 0x510   : > { %1660 = dma.done.wait (!%p1385_p7), %s1046_s23, 512  }
 0x511   : > { %1662 = vsyncadd (!%p1385_p7), %s1046_s23, 4294966784  ;;  %s20_s27 = sadd.s32 1, %s1713_s27   ;;  %s2216_s22 = sld [smem:[#allocation14_spill]] }
 0x512   : > { %p2138_p9 = scmp.ge.s32.totalorder %s20_s27, 10   ;;  %s2217_s14 = sld [smem:[#allocation15_spill]] }
 0x513   : > { %s2218_s25 = sld [smem:[#allocation16_spill]]  ;;  %s2219_s10 = sld [smem:[#allocation17_spill]] }
 0x514   : > { %s2220_s15 = smov %s1681_s19  ;;  %s2221_s16 = smov %s1673_s17 }
 0x515   : > { %s2222_s17 = smov %s1677_s18  ;;  %s2223_s18 = smov %s1880_s4 }
 0x516   : > { %s2224_s19 = smov %s1685_s20  ;;  %s2225_s20 = smov %s1877_s28 }
 0x517   : > { %s2226_s21 = smov %s1701_s24  ;;  %s2227_s23 = smov %s1709_s26 }
 0x518   : > { %s2228_s24 = smov %s2217_s14  ;;  %19 = sbr.rel (!%p2138_p9) target bundleno = 14 (0xe), region = 135 }
 0x519   : > { %s2229_s26 = smov %s2219_s10 }
 0x51f   :  { %1051 = vsyncpa [#allocation8], 1 }
 0x520   :  { %1053 = vsyncpa [#allocation8 + $0x1], 1 }
 0x521   :  { %1054 = vsyncpa [#allocation9], 1 }
 0x522   :  { %1056 = vsyncpa [#allocation9 + $0x1], 1 }

</bundles_post_ra>
